<compile_context>
chip_gen: v5e
topology: v5e:2x2
jax: 0.10.0
libtpu: 0.0.40
codegen_flags: <defaults>
</compile_context>

<pallas_src>
import jax
import jax.numpy as jnp
import numpy as np
from jax.experimental import pallas as pl
from jax.experimental.pallas import tpu as pltpu


def _fm_attn_kernel(x_ref, w1_ref, b1_ref, w2t_ref, o_ref):
    # x_ref  : (TB, P, E)      TB batch elements, P = F1*F2 pair slots each
    # w1_ref : (E, A)          first linear weight (input-major)
    # b1_ref : (1, A)          first linear bias
    # w2t_ref: (1, A)          second linear weight (A -> 1), lane-major
    # o_ref  : (TB*F1, F2)     softmax over the field_j axis
    tb, P, E = x_ref.shape
    A = w1_ref.shape[1]
    G, F2 = o_ref.shape                                   # G = TB * F1 softmax groups

    # Single large-M matmul on the MXU: (TB*P, E) @ (E, A).
    # The reshape only merges leading dims (last dim E untouched) -> no lane crossing.
    x = x_ref[...].reshape(tb * P, E)
    h = jnp.dot(x, w1_ref[...], preferred_element_type=jnp.float32)   # (TB*P, A)
    h = jnp.maximum(h + b1_ref[...], 0.0)                             # bias + ReLU (VPU)

    # Second linear (A -> 1): broadcast-multiply + reduce over the A lanes.
    # b2 is omitted: adding a uniform scalar before softmax cancels out exactly.
    s = jnp.sum((h * w2t_ref[...]).reshape(G, F2, A), axis=-1)        # (G, F2) logits

    # Numerically-stable softmax over field_j (PyTorch dim=2).
    m = jnp.max(s, axis=-1, keepdims=True)
    e = jnp.exp(s - m)
    denom = jnp.sum(e, axis=-1, keepdims=True)
    r = pl.reciprocal(denom, approx=True)                 # EUP vrcp (free slot)
    r = r * (2.0 - denom * r)                             # one Newton step -> ~f32 accuracy
    o_ref[...] = (e * r).astype(o_ref.dtype)


def fm_attention_layer(interactions, w1, b1, w2, b2, *, tb=None):
    """interactions: (B, F1, F2, E) float32.
       w1: (E, A), b1: (A,), w2: (A, 1), b2: (1,)  -- nn.Linear params (input-major)."""
    B, F1, F2, E = interactions.shape
    A = w1.shape[1]
    P = F1 * F2

    if tb is None:
        # Target ~4K pair-slot rows per grid step: big enough to amortize per-step pipeline
        # overhead, small enough that the lane-padded (E=32 -> 128 lanes), double-buffered
        # input block stays well under the default scoped-VMEM limit on all generations.
        target_rows = 4096
        tb = max(1, min(B, target_rows // max(P, 1)))
        while B % tb:                                     # tb must divide B
            tb -= 1

    x3 = interactions.reshape(B, P, E)                    # free reshape (row-major contiguous)
    b1_2d = b1.reshape(1, A)
    w2_t = w2.reshape(1, A)                               # (A,1) -> (1,A), lane-major
    del b2                                                # softmax(s + c) == softmax(s)

    probs = pl.pallas_call(
        _fm_attn_kernel,
        out_shape=jax.ShapeDtypeStruct((B * F1, F2), jnp.float32),
        grid=(B // tb,),
        in_specs=[
            pl.BlockSpec((tb, P, E), lambda g: (g, 0, 0)),
            pl.BlockSpec((E, A), lambda g: (0, 0)),
            pl.BlockSpec((1, A), lambda g: (0, 0)),
            pl.BlockSpec((1, A), lambda g: (0, 0)),
        ],
        out_specs=pl.BlockSpec((tb * F1, F2), lambda g: (g, 0)),
        compiler_params=pltpu.CompilerParams(
            dimension_semantics=("parallel",)),           # batch axis shards across TCs on v7x
    )(x3, w1, b1_2d, w2_t)

    # Glue: restore the trailing singleton dim to match PyTorch's (B, F1, F2, 1).
    return probs.reshape(B, F1, F2, 1)


def _reference(interactions, w1, b1, w2, b2):
    h = jnp.maximum(interactions @ w1 + b1, 0.0)          # (B, F1, F2, A)
    s = h @ w2 + b2                                        # (B, F1, F2, 1)
    return jax.nn.softmax(s, axis=2)                       # softmax over dim=2, like torch


if __name__ == "__main__":
    E, A = 32, 16                                          # embd_dim, attn_factor

    key = jax.random.PRNGKey(0)
    k_x, k_w1, k_b1, k_w2, k_b2, k_x2 = jax.random.split(key, 6)

    # Deterministic init mimicking nn.Linear default (uniform +-1/sqrt(fan_in)).
    lim1 = 1.0 / np.sqrt(E)
    w1 = jax.random.uniform(k_w1, (E, A), minval=-lim1, maxval=lim1, dtype=jnp.float32)
    b1 = jax.random.uniform(k_b1, (A,), minval=-lim1, maxval=lim1, dtype=jnp.float32)
    lim2 = 1.0 / np.sqrt(A)
    w2 = jax.random.uniform(k_w2, (A, 1), minval=-lim2, maxval=lim2, dtype=jnp.float32)
    b2 = jax.random.uniform(k_b2, (1,), minval=-lim2, maxval=lim2, dtype=jnp.float32)

    # Small primary case (matches the module spec shapes).
    B, F1, F2 = 2, 8, 8
    interactions = jax.random.normal(k_x, (B, F1, F2, E), dtype=jnp.float32)
    out = jax.block_until_ready(fm_attention_layer(interactions, w1, b1, w2, b2))
    ref = _reference(interactions, w1, b1, w2, b2)
    np.testing.assert_allclose(np.asarray(out), np.asarray(ref), rtol=1e-4, atol=1e-5)
    assert out.shape == (B, F1, F2, 1)

    # Second case exercising TB batching with grid length > 1.
    B2 = 8
    interactions2 = jax.random.normal(k_x2, (B2, F1, F2, E), dtype=jnp.float32)
    out2 = jax.block_until_ready(fm_attention_layer(interactions2, w1, b1, w2, b2, tb=2))
    ref2 = _reference(interactions2, w1, b1, w2, b2)
    np.testing.assert_allclose(np.asarray(out2), np.asarray(ref2), rtol=1e-4, atol=1e-5)
    assert out2.shape == (B2, F1, F2, 1)

    print("KERNEL_OK")
</pallas_src>

<mosaic_0001>
module attributes {stable_mosaic.version = 11 : i64} {
  func.func @_fm_attn_kernel(%arg0: i32, %arg1: memref<2x64x32xf32, #tpu.memory_space<vmem>>, %arg2: memref<32x16xf32, #tpu.memory_space<vmem>>, %arg3: memref<1x16xf32, #tpu.memory_space<vmem>>, %arg4: memref<1x16xf32, #tpu.memory_space<vmem>>, %arg5: memref<16x8xf32, #tpu.memory_space<vmem>>) attributes {dimension_semantics = [#tpu.dimension_semantics<parallel>], iteration_bounds = array<i64: 1>, scalar_prefetch = 0 : i64, scratch_operands = 0 : i64, tpu.core_type = #tpu.core_type<tc>, window_params = [{transform_indices = @transform_0, window_bounds = array<i64: 2, 64, 32>}, {pipeline_mode = #tpu.pipeline_mode<synchronous>, transform_indices = @transform_1, window_bounds = array<i64: 32, 16>}, {pipeline_mode = #tpu.pipeline_mode<synchronous>, transform_indices = @transform_2, window_bounds = array<i64: 1, 16>}, {pipeline_mode = #tpu.pipeline_mode<synchronous>, transform_indices = @transform_3, window_bounds = array<i64: 1, 16>}, {transform_indices = @transform_4, window_bounds = array<i64: 16, 8>}]} {
    %c0 = arith.constant 0 : index
    %c0_0 = arith.constant 0 : index
    %c0_1 = arith.constant 0 : index
    %0 = vector.load %arg1[%c0, %c0_0, %c0_1] : memref<2x64x32xf32, #tpu.memory_space<vmem>>, vector<2x64x32xf32>
    %1 = vector.shape_cast %0 : vector<2x64x32xf32> to vector<128x32xf32>
    %c0_2 = arith.constant 0 : index
    %c0_3 = arith.constant 0 : index
    %2 = vector.load %arg2[%c0_2, %c0_3] : memref<32x16xf32, #tpu.memory_space<vmem>>, vector<32x16xf32>
    %cst = arith.constant dense<0.000000e+00> : vector<128x16xf32>
    %3 = tpu.matmul %1, %2, %cst {dimension_numbers = #tpu.dot_dimension_numbers<[1], [0], [0], [1], [0, 0, 1, 1], [], []>} : vector<128x32xf32>, vector<32x16xf32>, vector<128x16xf32> -> vector<128x16xf32>
    %c0_4 = arith.constant 0 : index
    %c0_5 = arith.constant 0 : index
    %4 = vector.load %arg3[%c0_4, %c0_5] : memref<1x16xf32, #tpu.memory_space<vmem>>, vector<1x16xf32>
    %5 = vector.broadcast %4 : vector<1x16xf32> to vector<128x16xf32>
    %6 = arith.addf %3, %5 : vector<128x16xf32>
    %cst_6 = arith.constant 0.000000e+00 : f32
    %7 = vector.broadcast %cst_6 : f32 to vector<128x16xf32>
    %8 = arith.maximumf %6, %7 : vector<128x16xf32>
    %c0_7 = arith.constant 0 : index
    %c0_8 = arith.constant 0 : index
    %9 = vector.load %arg4[%c0_7, %c0_8] : memref<1x16xf32, #tpu.memory_space<vmem>>, vector<1x16xf32>
    %10 = vector.broadcast %9 : vector<1x16xf32> to vector<128x16xf32>
    %11 = arith.mulf %8, %10 : vector<128x16xf32>
    %12 = vector.shape_cast %11 : vector<128x16xf32> to vector<16x8x16xf32>
    %cst_9 = arith.constant dense<0.000000e+00> : vector<16x8xf32>
    %13 = vector.multi_reduction <add>, %12, %cst_9 [2] : vector<16x8x16xf32> to vector<16x8xf32>
    %cst_10 = arith.constant dense<0xFF800000> : vector<16xf32>
    %14 = vector.multi_reduction <maximumf>, %13, %cst_10 [1] : vector<16x8xf32> to vector<16xf32>
    %15 = vector.shape_cast %14 : vector<16xf32> to vector<16x1xf32>
    %16 = vector.broadcast %15 : vector<16x1xf32> to vector<16x8xf32>
    %17 = arith.subf %13, %16 : vector<16x8xf32>
    %18 = math.exp %17 : vector<16x8xf32>
    %cst_11 = arith.constant dense<0.000000e+00> : vector<16xf32>
    %19 = vector.multi_reduction <add>, %18, %cst_11 [1] : vector<16x8xf32> to vector<16xf32>
    %20 = vector.shape_cast %19 : vector<16xf32> to vector<16x1xf32>
    %21 = tpu.reciprocal %20 {approx = true} : vector<16x1xf32> -> vector<16x1xf32>
    %22 = arith.mulf %20, %21 : vector<16x1xf32>
    %cst_12 = arith.constant 2.000000e+00 : f32
    %23 = vector.broadcast %cst_12 : f32 to vector<16x1xf32>
    %24 = arith.subf %23, %22 : vector<16x1xf32>
    %25 = arith.mulf %21, %24 : vector<16x1xf32>
    %26 = vector.broadcast %25 : vector<16x1xf32> to vector<16x8xf32>
    %27 = arith.mulf %18, %26 : vector<16x8xf32>
    %c0_13 = arith.constant 0 : index
    %c0_14 = arith.constant 0 : index
    %28 = vector.load %arg5[%c0_13, %c0_14] : memref<16x8xf32, #tpu.memory_space<vmem>>, vector<16x8xf32>
    tpu.vector_store %arg5[%c0_13, %c0_14], %27 {strides = array<i32>} : memref<16x8xf32, #tpu.memory_space<vmem>>, vector<16x8xf32>,
    return
  }
  func.func @transform_0(%arg0: i32) -> (i32, i32, i32) {
    %c0_i32 = arith.constant 0 : i32
    %c0_i32_0 = arith.constant 0 : i32
    %c0_i32_1 = arith.constant 0 : i32
    return %arg0, %c0_i32, %c0_i32_0 : i32, i32, i32
  }
  func.func @transform_1(%arg0: i32) -> (i32, i32) {
    %c0_i32 = arith.constant 0 : i32
    %c0_i32_0 = arith.constant 0 : i32
    %c0_i32_1 = arith.constant 0 : i32
    return %c0_i32, %c0_i32_0 : i32, i32
  }
  func.func @transform_2(%arg0: i32) -> (i32, i32) {
    %c0_i32 = arith.constant 0 : i32
    %c0_i32_0 = arith.constant 0 : i32
    %c0_i32_1 = arith.constant 0 : i32
    return %c0_i32, %c0_i32_0 : i32, i32
  }
  func.func @transform_3(%arg0: i32) -> (i32, i32) {
    %c0_i32 = arith.constant 0 : i32
    %c0_i32_0 = arith.constant 0 : i32
    %c0_i32_1 = arith.constant 0 : i32
    return %c0_i32, %c0_i32_0 : i32, i32
  }
  func.func @transform_4(%arg0: i32) -> (i32, i32) {
    %c0_i32 = arith.constant 0 : i32
    %c0_i32_0 = arith.constant 0 : i32
    return %arg0, %c0_i32 : i32, i32
  }
}

</mosaic_0001>

<bundles_post_ra>
// kernel: tpu_custom_call.1
= control target key start
LH: loop header
LB: loop body
LE: loop exit
PB: predicated region body
PF: predicated region fallthrough
CT: control target
= control target key end

     0   :  { %vm41_vm0 = vcmask 261120   ;;  %vm191_vm1 = vcmask 130048   ;;  %vm274_vm2 = vcmask 1041409   ;;  %vm276_vm3 = vcmask 1042434   ;;  %s1116_s1 = inlined_call_operand.vmem [shape: f32[32,16], index: 1, kind: input, shape index: {}]   ;;  %s1117_s0 = inlined_call_operand.vmem [shape: f32[2,64,32], index: 0, kind: input, shape index: {}]   ;;  %s1118_s2 = inlined_call_operand.vmem [shape: f32[1,16], index: 2, kind: input, shape index: {}]   ;;  %s1119_s3 = inlined_call_operand.vmem [shape: f32[1,16], index: 3, kind: input, shape index: {}]   ;;  %s1120_s4 = inlined_call_operand.vmem [shape: f32[16,8], index: 4, kind: output, shape index: {}]  }
   0x1   :  { %v36_v0 = vld [vmem:[%s1116_s1 + $0x18] sm:$0xff]  ;;  %v35_v1 = vld [vmem:[%s1116_s1 + $0x10] sm:$0xff]  ;;  %v34_v2 = vld [vmem:[%s1116_s1 + $0x8] sm:$0xff]  ;;  %vm278_vm4 = vcmask 1043459   ;;  %vm280_vm5 = vcmask 1044484   ;;  %vm282_vm6 = vcmask 1045509  }
   0x2   :  { %102 = vmatpush.msra.mxu0 %v36_v0  ;;  %664 = vmatpush.msra.mxu1 %v36_v0  ;;  %v33_v3 = vld [vmem:[%s1116_s1] sm:$0xff]  ;;  %v18_v8 = vld [vmem:[%s1117_s0 + $0x8] sm:$0xff]  ;;  %v19_v12 = vld [vmem:[%s1117_s0 + $0x10] sm:$0xff]  ;;  %vm284_vm7 = vcmask 1046534   ;;  %vm286_vm8 = vcmask 1047559   ;;  %vm297_vm9 = vcmask 64512  }
   0x3   :  { %665 = vmatpush.msra.mxu2 %v36_v0  ;;  %666 = vmatpush.msra.mxu3 %v36_v0  ;;  %v17_v4 = vld [vmem:[%s1117_s0] sm:$0xff]  ;;  %v26_v9 = vld [vmem:[%s1117_s0 + $0x48] sm:$0xff]  ;;  %v27_v13 = vld [vmem:[%s1117_s0 + $0x50] sm:$0xff] }
   0x4   :  { %103 = vmatpush.msra.mxu0 %v35_v1  ;;  %667 = vmatpush.msra.mxu1 %v35_v1  ;;  %v21_v5 = vld [vmem:[%s1117_s0 + $0x20] sm:$0xff]  ;;  %v22_v10 = vld [vmem:[%s1117_s0 + $0x28] sm:$0xff]  ;;  %v23_v14 = vld [vmem:[%s1117_s0 + $0x30] sm:$0xff] }
   0x5   :  { %668 = vmatpush.msra.mxu2 %v35_v1  ;;  %669 = vmatpush.msra.mxu3 %v35_v1  ;;  %v25_v6 = vld [vmem:[%s1117_s0 + $0x40] sm:$0xff]  ;;  %v30_v11 = vld [vmem:[%s1117_s0 + $0x68] sm:$0xff]  ;;  %v31_v15 = vld [vmem:[%s1117_s0 + $0x70] sm:$0xff] }
   0x6   :  { %104 = vmatpush.msra.mxu0 %v34_v2  ;;  %670 = vmatpush.msra.mxu1 %v34_v2  ;;  %v29_v7 = vld [vmem:[%s1117_s0 + $0x60] sm:$0xff]  ;;  %v20_v16 = vld [vmem:[%s1117_s0 + $0x18] sm:$0xff] }
   0x7   :  { %671 = vmatpush.msra.mxu2 %v34_v2  ;;  %672 = vmatpush.msra.mxu3 %v34_v2  ;;  %v28_v17 = vld [vmem:[%s1117_s0 + $0x58] sm:$0xff]  ;;  %v823_v20 = vld [vmem:[%s1118_s2] ss:$0 sm:$0xff] }
   0x8   :  { %105 = vmatpush.msra.mxu0 %v33_v3  ;;  %673 = vmatpush.msra.mxu1 %v33_v3  ;;  %v24_v18 = vld [vmem:[%s1117_s0 + $0x38] sm:$0xff]  ;;  %v829_v24 = vld [vmem:[%s1119_s3] ss:$0 sm:$0xff] }
   0x9   :  { %674 = vmatpush.msra.mxu2 %v33_v3  ;;  %648 = vmatmul.msk.f32.vlgmr.msra.gmra.mxu0 %vm41_vm0, %v17_v4  ;;  %v32_v19 = vld [vmem:[%s1117_s0 + $0x78] sm:$0xff] }
   0xa   :  { %652 = vmatmul.msk.f32.vlgmr.msra.gmra.mxu1 %vm41_vm0, %v21_v5  ;;  %656 = vmatmul.msk.f32.vlgmr.msra.gmra.mxu2 %vm41_vm0, %v25_v6 }
   0xb   :  { %675 = vmatpush.msra.mxu3 %v33_v3 }
   0xc   :  { %660 = vmatmul.msk.f32.vlgmr.msra.gmra.mxu3 %vm41_vm0, %v29_v7 }
  0x11   :  { %649 = vmatmul.msk.f32.gmra.mxu0 %vm41_vm0, %v18_v8 }
  0x12   :  { %657 = vmatmul.msk.f32.gmra.mxu2 %vm41_vm0, %v26_v9  ;;  %653 = vmatmul.msk.f32.gmra.mxu1 %vm41_vm0, %v22_v10 }
  0x14   :  { %661 = vmatmul.msk.f32.gmra.mxu3 %vm41_vm0, %v30_v11 }
  0x19   :  { %650 = vmatmul.msk.f32.gmra.mxu0 %vm41_vm0, %v19_v12 }
  0x1a   :  { %658 = vmatmul.msk.f32.gmra.mxu2 %vm41_vm0, %v27_v13  ;;  %654 = vmatmul.msk.f32.gmra.mxu1 %vm41_vm0, %v23_v14 }
  0x1c   :  { %662 = vmatmul.msk.f32.gmra.mxu3 %vm41_vm0, %v31_v15 }
  0x21   :  { %651 = vmatmul.msk.f32.gmra.mxu0 %vm41_vm0, %v20_v16 }
  0x22   :  { %659 = vmatmul.msk.f32.gmra.mxu2 %vm41_vm0, %v28_v17  ;;  %655 = vmatmul.msk.f32.gmra.mxu1 %vm41_vm0, %v24_v18 }
  0x24   :  { %663 = vmatmul.msk.f32.gmra.mxu3 %vm41_vm0, %v32_v19 }
  0x86   :  { %v107_v21 = vpop.f32.mrf.mxu0 }
  0x87   :  { %v108_v22 = vadd.f32 %v823_v20, %v107_v21  ;;  %v119_v23 = vpop.f32.mrf.mxu1 }
  0x88   :  { %v120_v25 = vadd.f32 %v823_v20, %v119_v23 }
  0x89   :  { %v155_v26 = vmax.f32 %v108_v22, 0.0 }
  0x8a   :  { %v159_v27 = vmax.f32 %v120_v25, 0.0 }
  0x8b   :  { %v175_v28 = vmul.f32 %v829_v24, %v155_v26 }
  0x8c   :  { %v179_v29 = vmul.f32 %v829_v24, %v159_v27 }
  0x8d   :  { %v131_v30 = vpop.f32.mrf.mxu2  ;;  %v192_v31 = vsel %vm191_vm1, %v175_v28, 0.0 }
  0x8e   :  { %v132_v32 = vadd.f32 %v823_v20, %v131_v30  ;;  %v204_v33 = vsel %vm191_vm1, %v179_v29, 0.0  ;;  %v110_v34 = vpop.f32.mrf.mxu0  ;;  %193 = vadd.xlane.f32.xlu0 %v192_v31 }
  0x8f   :  { %v143_v35 = vpop.f32.mrf.mxu3  ;;  %205 = vadd.xlane.f32.xlu2 %v204_v33  ;;  %v122_v36 = vpop.f32.mrf.mxu1  ;;  %v111_v41 = vadd.f32 %v823_v20, %v110_v34 }
  0x90   :  { %v163_v37 = vmax.f32 %v132_v32, 0.0  ;;  %v144_v38 = vadd.f32 %v823_v20, %v143_v35  ;;  %v123_v39 = vadd.f32 %v823_v20, %v122_v36 }
  0x91   :  { %v156_v47 = vmax.f32 %v111_v41, 0.0 }
  0x92   :  { %v167_v40 = vmax.f32 %v144_v38, 0.0  ;;  %v183_v42 = vmul.f32 %v829_v24, %v163_v37  ;;  %v160_v45 = vmax.f32 %v123_v39, 0.0 }
  0x93   :  { %v176_v55 = vmul.f32 %v829_v24, %v156_v47 }
  0x94   :  { %v216_v43 = vsel %vm191_vm1, %v183_v42, 0.0  ;;  %v187_v44 = vmul.f32 %v829_v24, %v167_v40  ;;  %v180_v52 = vmul.f32 %v829_v24, %v160_v45  ;;  %v256_v45 = vlaneseq }
  0x95   :  { %v134_v46 = vpop.f32.mrf.mxu2  ;;  %v195_v63 = vsel %vm191_vm1, %v176_v55, 0.0 }
  0x96   :  { %v113_v48 = vpop.f32.mrf.mxu0  ;;  %v228_v49 = vsel %vm191_vm1, %v187_v44, 0.0  ;;  %v135_v54 = vadd.f32 %v823_v20, %v134_v46  ;;  %v207_v58 = vsel %vm191_vm1, %v180_v52, 0.0 }
  0x97   :  { %217 = vadd.xlane.f32.xlu2 %v216_v43  ;;  %v114_v50 = vadd.f32 %v823_v20, %v113_v48  ;;  %229 = vadd.xlane.f32.xlu0 %v228_v49  ;;  %v146_v51 = vpop.f32.mrf.mxu3  ;;  %v125_v56 = vpop.f32.mrf.mxu1 }
  0x98   :  { %v164_v61 = vmax.f32 %v135_v54, 0.0  ;;  %v126_v4 = vadd.f32 %v823_v20, %v125_v56  ;;  %v147_v31 = vadd.f32 %v823_v20, %v146_v51 }
  0x99   :  { %v157_v53 = vmax.f32 %v114_v50, 0.0 }
  0x9a   :  { %v184_v6 = vmul.f32 %v829_v24, %v164_v61  ;;  %v161_v8 = vmax.f32 %v126_v4, 0.0  ;;  %v168_v35 = vmax.f32 %v147_v31, 0.0 }
  0x9b   :  { %v177_v57 = vmul.f32 %v829_v24, %v157_v53 }
  0x9c   :  { %v219_v13 = vsel %vm191_vm1, %v184_v6, 0.0  ;;  %v181_v19 = vmul.f32 %v829_v24, %v161_v8  ;;  %v188_v38 = vmul.f32 %v829_v24, %v168_v35 }
  0x9d   :  { %v137_v59 = vpop.f32.mrf.mxu2  ;;  %v198_v60 = vsel %vm191_vm1, %v177_v57, 0.0 }
  0x9e   :  { %v138_v62 = vadd.f32 %v823_v20, %v137_v59  ;;  %199 = vadd.xlane.f32.xlu1 %v198_v60  ;;  %v116_v0 = vpop.f32.mrf.mxu0  ;;  %v210_v28 = vsel %vm191_vm1, %v181_v19, 0.0  ;;  %v231_v39 = vsel %vm191_vm1, %v188_v38, 0.0 }
  0x9f   :  { %196 = vadd.xlane.f32.xlu0 %v195_v63  ;;  %208 = vadd.xlane.f32.xlu2 %v207_v58  ;;  %v117_v1 = vadd.f32 %v823_v20, %v116_v0  ;;  %v149_v2 = vpop.f32.mrf.mxu3  ;;  %v128_v10 = vpop.f32.mrf.mxu1 }
  0xa0   :  { %v165_v3 = vmax.f32 %v138_v62, 0.0  ;;  %v150_v14 = vadd.f32 %v823_v20, %v149_v2  ;;  %v129_v15 = vadd.f32 %v823_v20, %v128_v10 }
  0xa1   :  { %v158_v7 = vmax.f32 %v117_v1, 0.0 }
  0xa2   :  { %v185_v5 = vmul.f32 %v829_v24, %v165_v3  ;;  %v169_v23 = vmax.f32 %v150_v14, 0.0  ;;  %v162_v25 = vmax.f32 %v129_v15, 0.0 }
  0xa3   :  { %v178_v16 = vmul.f32 %v829_v24, %v158_v7 }
  0xa4   :  { %v222_v9 = vsel %vm191_vm1, %v185_v5, 0.0  ;;  %v189_v30 = vmul.f32 %v829_v24, %v169_v23  ;;  %v182_v32 = vmul.f32 %v829_v24, %v162_v25 }
  0xa5   :  { %v140_v11 = vpop.f32.mrf.mxu2  ;;  %v201_v26 = vsel %vm191_vm1, %v178_v16, 0.0 }
  0xa6   :  { %v141_v12 = vadd.f32 %v823_v20, %v140_v11  ;;  %223 = vadd.xlane.f32.xlu1 %v222_v9  ;;  %v234_v34 = vsel %vm191_vm1, %v189_v30, 0.0  ;;  %v213_v36 = vsel %vm191_vm1, %v182_v32, 0.0 }
  0xa7   :  { %220 = vadd.xlane.f32.xlu0 %v219_v13  ;;  %v152_v17 = vpop.f32.mrf.mxu3 }
  0xa8   :  { %v166_v18 = vmax.f32 %v141_v12, 0.0  ;;  %v153_v21 = vadd.f32 %v823_v20, %v152_v17 }
  0xaa   :  { %v186_v22 = vmul.f32 %v829_v24, %v166_v18  ;;  %v170_v29 = vmax.f32 %v153_v21, 0.0 }
  0xac   :  { %v225_v27 = vsel %vm191_vm1, %v186_v22, 0.0  ;;  %v190_v33 = vmul.f32 %v829_v24, %v170_v29  ;;  %v892_v24 = vand.u32 127, %v256_v45 }
  0xad   :  { %226 = vadd.xlane.f32.xlu2 %v225_v27 }
  0xae   :  { %202 = vadd.xlane.f32.xlu1 %v201_v26  ;;  %v237_v37 = vsel %vm191_vm1, %v190_v33, 0.0  ;;  %v718_v26 = vmov 0  }
  0xaf   :  { %211 = vadd.xlane.f32.xlu0 %v210_v28  ;;  %679 = vset.pattern.permute.xlu2 %v718_v26 }
  0xb0   :  { %678 = vset.pattern.permute.xlu1 %v718_v26  ;;  %677 = vset.pattern.permute.xlu0 %v718_v26 }
  0xb5   :  { %235 = vadd.xlane.f32.xlu2 %v234_v34 }
  0xb6   :  { %214 = vadd.xlane.f32.xlu1 %v213_v36 }
  0xb7   :  { %238 = vadd.xlane.f32.xlu0 %v237_v37 }
  0xbe   :  { %232 = vadd.xlane.f32.xlu1 %v231_v39 }
 0x101   :  { %v878_v20 = vpop.xlane.xlu0 %193 }
 0x102   :  { %v880_v40 = vpop.xlane.xlu2 %205  ;;  %v258_v50 = vperm.slane %v878_v20, %v892_v24 }
 0x103   :  { %v262_v55 = vperm.slane %v880_v40, %v892_v24 }
 0x10a   :  { %v882_v41 = vpop.xlane.xlu0 %229  ;;  %v888_v44 = vpop.xlane.xlu2 %217 }
 0x10b   :  { %v266_v2 = vperm.slane %v888_v44, %v892_v24  ;;  %v270_v14 = vperm.slane %v882_v41, %v892_v24 }
 0x111   :  { %v884_v42 = vpop.xlane.xlu1 %199 }
 0x112   :  { %v886_v43 = vpop.xlane.xlu0 %196  ;;  %v896_v48 = vpop.xlane.xlu2 %208  ;;  %v260_v51 = vperm.slane %v884_v42, %v892_v24 }
 0x113   :  { %v259_v47 = vperm.slane %v886_v43, %v892_v24  ;;  %v263_v59 = vperm.slane %v896_v48, %v892_v24 }
 0x115   :  { %v275_v52 = vsel %vm274_vm2, %v259_v47, %v258_v50 }
 0x116   :  { %v277_v56 = vsel %vm276_vm3, %v260_v51, %v275_v52 }
 0x119   :  { %v890_v46 = vpop.xlane.xlu1 %223 }
 0x11a   :  { %v898_v49 = vpop.xlane.xlu0 %220  ;;  %v268_v4 = vperm.slane %v890_v46, %v892_v24 }
 0x11b   :  { %v267_v62 = vperm.slane %v898_v49, %v892_v24 }
 0x11d   :  { %v288_v6 = vsel %vm274_vm2, %v267_v62, %v266_v2 }
 0x11e   :  { %v289_v11 = vsel %vm276_vm3, %v268_v4, %v288_v6 }
 0x120   :  { %v916_v60 = vpop.xlane.xlu2 %226 }
 0x121   :  { %v905_v53 = vpop.xlane.xlu1 %202  ;;  %v269_v7 = vperm.slane %v916_v60, %v892_v24 }
 0x122   :  { %v261_v54 = vperm.slane %v905_v53, %v892_v24  ;;  %v918_v61 = vpop.xlane.xlu0 %211 }
 0x123   :  { %v264_v0 = vperm.slane %v918_v61, %v892_v24  ;;  %v290_v13 = vsel %vm278_vm4, %v269_v7, %v289_v11 }
 0x124   :  { %v279_v57 = vsel %vm278_vm4, %v261_v54, %v277_v56  ;;  %v291_v19 = vsel %vm280_vm5, %v270_v14, %v290_v13 }
 0x125   :  { %v281_v58 = vsel %vm280_vm5, %v262_v55, %v279_v57 }
 0x126   :  { %v283_v63 = vsel %vm282_vm6, %v263_v59, %v281_v58 }
 0x127   :  { %v285_v5 = vsel %vm284_vm7, %v264_v0, %v283_v63 }
 0x128   :  { %v936_v10 = vpop.xlane.xlu2 %235 }
 0x129   :  { %v215_v1 = vpop.xlane.xlu1 %214  ;;  %v272_v16 = vperm.slane %v936_v10, %v892_v24 }
 0x12a   :  { %v265_v3 = vperm.slane %v215_v1, %v892_v24  ;;  %v939_v12 = vpop.xlane.xlu0 %238 }
 0x12b   :  { %v273_v18 = vperm.slane %v939_v12, %v892_v24 }
 0x12c   :  { %v287_v8 = vsel %vm286_vm8, %v265_v3, %v285_v5 }
 0x12d   :  { %v298_v9 = vsel %vm297_vm9, %v287_v8, -inf }
 0x12e   :  { %299 = vmax.xlane.f32.xlu1 %v298_v9 }
 0x131   :  { %v944_v15 = vpop.xlane.xlu1 %232 }
 0x132   :  { %v271_v17 = vperm.slane %v944_v15, %v892_v24 }
 0x134   :  { %v292_v21 = vsel %vm282_vm6, %v271_v17, %v291_v19 }
 0x135   :  { %v293_v22 = vsel %vm284_vm7, %v272_v16, %v292_v21 }
 0x136   :  { %v294_v23 = vsel %vm286_vm8, %v273_v18, %v293_v22 }
 0x137   :  { %v301_v25 = vsel %vm297_vm9, %v294_v23, -inf }
 0x138   :  { %302 = vmax.xlane.f32.xlu2 %v301_v25 }
 0x1a1   :  { %v300_v27 = vpop.xlane.xlu1 %299 }
 0x1a2   :  { %v307_v28 = vperm.slane %v300_v27, 1  ;;  %v306_v29 = vperm.slane %v300_v27, 0  ;;  %v308_v30 = vperm.slane %v300_v27, 2  ;;  %v310_v34 = vperm.slane %v300_v27, 4 }
 0x1a3   :  { %v313_v35 = vperm.slane %v300_v27, 7  ;;  %v309_v36 = vperm.slane %v300_v27, 3  ;;  %v311_v56 = vperm.slane %v300_v27, 5 }
 0x1a4   :  { %v339_v31 = vsub.f32 %v886_v43, %v307_v28  ;;  %v338_v32 = vsub.f32 %v878_v20, %v306_v29  ;;  %v340_v33 = vsub.f32 %v884_v42, %v308_v30  ;;  %v342_v45 = vsub.f32 %v880_v40, %v310_v34 }
 0x1a5   :  { %v345_v47 = vsub.f32 %v215_v1, %v313_v35  ;;  %v341_v50 = vsub.f32 %v905_v53, %v309_v36  ;;  %v312_v20 = vperm.slane %v300_v27, 6  ;;  %v343_v59 = vsub.f32 %v896_v48, %v311_v56 }
 0x1a6   :  { %v356_v37 = vmul.f32 1.442695, %v339_v31  ;;  %v354_v38 = vmul.f32 1.442695, %v338_v32  ;;  %v358_v39 = vmul.f32 1.442695, %v340_v33 }
 0x1a7   :  { %v362_v43 = vmul.f32 1.442695, %v342_v45  ;;  %v368_v52 = vmul.f32 1.442695, %v345_v47  ;;  %v360_v55 = vmul.f32 1.442695, %v341_v50  ;;  %v344_v53 = vsub.f32 %v918_v61, %v312_v20 }
 0x1a8   :  { %682 = vpow2.f32 %v356_v37  ;;  %v364_v3 = vmul.f32 1.442695, %v343_v59 }
 0x1a9   :  { %684 = vpow2.f32 %v354_v38  ;;  %v366_v62 = vmul.f32 1.442695, %v344_v53 }
 0x1aa   :  { %686 = vpow2.f32 %v358_v39 }
 0x1ab   :  { %v962_v51 = vpop.xlane.xlu2 %302  ;;  %688 = vpow2.f32 %v362_v43 }
 0x1ac   :  { %v316_v42 = vperm.slane %v962_v51, 2  ;;  %690 = vpow2.f32 %v368_v52  ;;  %v315_v63 = vperm.slane %v962_v51, 1  ;;  %v319_v1 = vperm.slane %v962_v51, 5 }
 0x1ad   :  { %692 = vpow2.f32 %v360_v55  ;;  %v314_v4 = vperm.slane %v962_v51, 0  ;;  %v318_v8 = vperm.slane %v962_v51, 4  ;;  %v317_v14 = vperm.slane %v962_v51, 3 }
 0x1ae   :  { %v965_v54 = vpop.eup %682  ;;  %v348_v58 = vsub.f32 %v890_v46, %v316_v42  ;;  %694 = vpow2.f32 %v366_v62  ;;  %v347_v46 = vsub.f32 %v898_v49, %v315_v63  ;;  %v351_v48 = vsub.f32 %v944_v15, %v319_v1 }
 0x1af   :  { %v967_v57 = vpop.eup %684  ;;  %406 = vperm.xlu1 %678, %v965_v54   ;;  %v346_v6 = vsub.f32 %v888_v44, %v314_v4  ;;  %v350_v44 = vsub.f32 %v882_v41, %v318_v8  ;;  %v349_v15 = vsub.f32 %v916_v60, %v317_v14  ;;  %v321_v18 = vperm.slane %v962_v51, 7 }
 0x1b0   :  { %v970_v40 = vpop.eup %686  ;;  %403 = vperm.xlu0 %677, %v967_v57   ;;  %v374_v0 = vmul.f32 1.442695, %v348_v58  ;;  %v372_v7 = vmul.f32 1.442695, %v347_v46  ;;  %v380_v9 = vmul.f32 1.442695, %v351_v48 }
 0x1b1   :  { %409 = vperm.xlu2 %679, %v970_v40   ;;  %v979_v2 = vpop.eup %688  ;;  %v370_v13 = vmul.f32 1.442695, %v346_v6  ;;  %v378_v17 = vmul.f32 1.442695, %v350_v44  ;;  %v376_v21 = vmul.f32 1.442695, %v349_v15  ;;  %v353_v41 = vsub.f32 %v939_v12, %v321_v18 }
 0x1b2   :  { %v982_v61 = vpop.eup %690  ;;  %696 = vpow2.f32 %v374_v0  ;;  %v320_v22 = vperm.slane %v962_v51, 6 }
 0x1b3   :  { %v985_v5 = vpop.eup %692  ;;  %698 = vpow2.f32 %v364_v3  ;;  %v384_v26 = vmul.f32 1.442695, %v353_v41 }
 0x1b4   :  { %v993_v11 = vpop.eup %694  ;;  %700 = vpow2.f32 %v372_v7  ;;  %v352_v60 = vsub.f32 %v936_v10, %v320_v22 }
 0x1b5   :  { %702 = vpow2.f32 %v380_v9 }
 0x1b6   :  { %704 = vpow2.f32 %v370_v13  ;;  %v382_v28 = vmul.f32 1.442695, %v352_v60 }
 0x1b7   :  { %415 = vperm.xlu1 %678, %v979_v2   ;;  %706 = vpow2.f32 %v378_v17 }
 0x1b8   :  { %424 = vperm.xlu0 %677, %v982_v61   ;;  %v996_v16 = vpop.eup %696  ;;  %708 = vpow2.f32 %v376_v21 }
 0x1b9   :  { %412 = vperm.xlu2 %679, %v985_v5   ;;  %v999_v49 = vpop.eup %698  ;;  %710 = vpow2.f32 %v384_v26 }
 0x1ba   :  { %v1006_v19 = vpop.eup %700  ;;  %712 = vpow2.f32 %v382_v28 }
 0x1bb   :  { %v1009_v23 = vpop.eup %702 }
 0x1bc   :  { %v1012_v25 = vpop.eup %704 }
 0x1bd   :  { %v1018_v27 = vpop.eup %706 }
 0x1be   :  { %v1021_v29 = vpop.eup %708 }
 0x1bf   :  { %421 = vperm.xlu1 %678, %v993_v11   ;;  %v1024_v30 = vpop.eup %710 }
 0x1c0   :  { %433 = vperm.xlu0 %677, %v996_v16   ;;  %v1027_v12 = vpop.eup %712 }
 0x1c1   :  { %418 = vperm.xlu2 %679, %v999_v49  }
 0x1c7   :  { %430 = vperm.xlu1 %678, %v1006_v19  }
 0x1c8   :  { %442 = vperm.xlu0 %677, %v1009_v23  }
 0x1c9   :  { %427 = vperm.xlu2 %679, %v1012_v25  }
 0x1cf   :  { %439 = vperm.xlu1 %678, %v1018_v27  }
 0x1d1   :  { %436 = vperm.xlu2 %679, %v1021_v29  }
 0x1d7   :  { %448 = vperm.xlu1 %678, %v1024_v30  }
 0x1d9   :  { %445 = vperm.xlu2 %679, %v1027_v12  }
 0x20b   :  { %v410_v10 = vpop.permute.xlu2 %409 }
 0x20c   :  { %v452_v39 = vperm.slane %v410_v10, %v892_v24 }
 0x213   :  { %v413_v31 = vpop.permute.xlu2 %412 }
 0x214   :  { %v453_v50 = vperm.slane %v413_v31, %v892_v24 }
 0x21b   :  { %v419_v36 = vpop.permute.xlu2 %418 }
 0x21c   :  { %v455_v52 = vperm.slane %v419_v36, %v892_v24 }
 0x221   :  { %v407_v32 = vpop.permute.xlu1 %406 }
 0x222   :  { %v404_v33 = vpop.permute.xlu0 %403  ;;  %v451_v34 = vperm.slane %v407_v32, %v892_v24 }
 0x223   :  { %v450_v35 = vperm.slane %v404_v33, %v892_v24  ;;  %v428_v55 = vpop.permute.xlu2 %427 }
 0x224   :  { %v458_v4 = vperm.slane %v428_v55, %v892_v24 }
 0x225   :  { %v466_v37 = vsel %vm274_vm2, %v451_v34, %v450_v35 }
 0x226   :  { %v467_v45 = vsel %vm276_vm3, %v452_v39, %v466_v37 }
 0x227   :  { %v468_v51 = vsel %vm278_vm4, %v453_v50, %v467_v45 }
 0x229   :  { %v416_v38 = vpop.permute.xlu1 %415 }
 0x22a   :  { %v454_v47 = vperm.slane %v416_v38, %v892_v24  ;;  %v425_v43 = vpop.permute.xlu0 %424 }
 0x22b   :  { %v457_v53 = vperm.slane %v425_v43, %v892_v24  ;;  %v437_v46 = vpop.permute.xlu2 %436 }
 0x22c   :  { %v469_v20 = vsel %vm280_vm5, %v454_v47, %v468_v51  ;;  %v461_v9 = vperm.slane %v437_v46, %v892_v24 }
 0x22d   :  { %v470_v58 = vsel %vm282_vm6, %v455_v52, %v469_v20 }
 0x231   :  { %v422_v42 = vpop.permute.xlu1 %421 }
 0x232   :  { %v456_v56 = vperm.slane %v422_v42, %v892_v24  ;;  %v434_v0 = vpop.permute.xlu0 %433 }
 0x233   :  { %v460_v6 = vperm.slane %v434_v0, %v892_v24  ;;  %v446_v17 = vpop.permute.xlu2 %445 }
 0x234   :  { %v471_v59 = vsel %vm284_vm7, %v456_v56, %v470_v58  ;;  %v464_v22 = vperm.slane %v446_v17, %v892_v24 }
 0x235   :  { %v472_v62 = vsel %vm286_vm8, %v457_v53, %v471_v59 }
 0x236   :  { %v482_v63 = vsel %vm297_vm9, %v472_v62, 0.0 }
 0x237   :  { %483 = vadd.xlane.f32.xlu0 %v482_v63 }
 0x239   :  { %v431_v1 = vpop.permute.xlu1 %430 }
 0x23a   :  { %v459_v3 = vperm.slane %v431_v1, %v892_v24  ;;  %v443_v14 = vpop.permute.xlu0 %442 }
 0x23b   :  { %v463_v18 = vperm.slane %v443_v14, %v892_v24 }
 0x23c   :  { %v473_v48 = vsel %vm274_vm2, %v459_v3, %v458_v4 }
 0x23d   :  { %v474_v7 = vsel %vm276_vm3, %v460_v6, %v473_v48 }
 0x23e   :  { %v475_v44 = vsel %vm278_vm4, %v461_v9, %v474_v7 }
 0x241   :  { %v440_v8 = vpop.permute.xlu1 %439 }
 0x242   :  { %v462_v13 = vperm.slane %v440_v8, %v892_v24 }
 0x244   :  { %v476_v15 = vsel %vm280_vm5, %v462_v13, %v475_v44 }
 0x245   :  { %v477_v21 = vsel %vm282_vm6, %v463_v18, %v476_v15 }
 0x246   :  { %v478_v26 = vsel %vm284_vm7, %v464_v22, %v477_v21 }
 0x249   :  { %v449_v41 = vpop.permute.xlu1 %448 }
 0x24a   :  { %v465_v60 = vperm.slane %v449_v41, %v892_v24 }
 0x24c   :  { %v479_v28 = vsel %vm286_vm8, %v465_v60, %v478_v26 }
 0x24d   :  { %v485_v10 = vsel %vm297_vm9, %v479_v28, 0.0 }
 0x24e   :  { %486 = vadd.xlane.f32.xlu2 %v485_v10 }
 0x2aa   :  { %v484_v31 = vpop.xlane.xlu0 %483 }
 0x2ab   :  { %714 = vrcp.f32 %v484_v31 }
 0x2b1   :  { %v715_v32 = vpop.eup %714 }
 0x2b2   :  { %v490_v33 = vmul.f32 %v715_v32, %v484_v31 }
 0x2b4   :  { %v492_v34 = vsub.f32 2.0, %v490_v33 }
 0x2b6   :  { %v494_v35 = vmul.f32 %v715_v32, %v492_v34 }
 0x2b8   :  { %v505_v36 = vperm.slane %v494_v35, 7  ;;  %v504_v37 = vperm.slane %v494_v35, 6  ;;  %v498_v38 = vperm.slane %v494_v35, 0  ;;  %v499_v50 = vperm.slane %v494_v35, 1 }
 0x2b9   :  { %v500_v20 = vperm.slane %v494_v35, 2  ;;  %v502_v0 = vperm.slane %v494_v35, 4 }
 0x2ba   :  { %v537_v39 = vmul.f32 %v982_v61, %v505_v36  ;;  %v536_v45 = vmul.f32 %v993_v11, %v504_v37  ;;  %v530_v47 = vmul.f32 %v967_v57, %v498_v38  ;;  %v531_v43 = vmul.f32 %v965_v54, %v499_v50 }
 0x2bb   :  { %v532_v56 = vmul.f32 %v970_v40, %v500_v20  ;;  %v501_v57 = vperm.slane %v494_v35, 3  ;;  %v534_v3 = vmul.f32 %v979_v2, %v502_v0 }
 0x2bc   :  { %584 = vperm.xlu0 %677, %v537_v39   ;;  %581 = vperm.xlu2 %679, %v536_v45  }
 0x2bd   :  { %563 = vperm.xlu1 %678, %v530_v47   ;;  %v533_v54 = vmul.f32 %v985_v5, %v501_v57 }
 0x2c1   :  { %v487_v51 = vpop.xlane.xlu2 %486 }
 0x2c2   :  { %716 = vrcp.f32 %v487_v51 }
 0x2c5   :  { %566 = vperm.xlu1 %678, %v531_v43  }
 0x2c8   :  { %v717_v52 = vpop.eup %716 }
 0x2c9   :  { %v491_v42 = vmul.f32 %v717_v52, %v487_v51 }
 0x2cb   :  { %v493_v55 = vsub.f32 2.0, %v491_v42 }
 0x2cd   :  { %v495_v61 = vmul.f32 %v717_v52, %v493_v55  ;;  %569 = vperm.xlu1 %678, %v532_v56  }
 0x2cf   :  { %v508_v11 = vperm.slane %v495_v61, 2  ;;  %v510_v53 = vperm.slane %v495_v61, 4  ;;  %v511_v62 = vperm.slane %v495_v61, 5  ;;  %v513_v63 = vperm.slane %v495_v61, 7 }
 0x2d0   :  { %v506_v4 = vperm.slane %v495_v61, 0  ;;  %v507_v46 = vperm.slane %v495_v61, 1  ;;  %v512_v6 = vperm.slane %v495_v61, 6 }
 0x2d1   :  { %v540_v58 = vmul.f32 %v996_v16, %v508_v11  ;;  %v542_v59 = vmul.f32 %v1018_v27, %v510_v53  ;;  %v543_v1 = vmul.f32 %v1009_v23, %v511_v62  ;;  %v545_v40 = vmul.f32 %v1024_v30, %v513_v63 }
 0x2d2   :  { %v503_v16 = vperm.slane %v494_v35, 5  ;;  %v538_v5 = vmul.f32 %v1012_v25, %v506_v4  ;;  %v539_v48 = vmul.f32 %v1006_v19, %v507_v46  ;;  %v509_v23 = vperm.slane %v495_v61, 3 }
 0x2d3   :  { %593 = vperm.xlu0 %677, %v540_v58   ;;  %599 = vperm.xlu2 %679, %v542_v59   ;;  %v544_v2 = vmul.f32 %v1027_v12, %v512_v6 }
 0x2d4   :  { %v535_v27 = vmul.f32 %v999_v49, %v503_v16  ;;  %v541_v30 = vmul.f32 %v1021_v29, %v509_v23 }
 0x2d5   :  { %572 = vperm.xlu1 %678, %v533_v54  }
 0x2db   :  { %602 = vperm.xlu0 %677, %v543_v1   ;;  %608 = vperm.xlu2 %679, %v545_v40  }
 0x2dd   :  { %575 = vperm.xlu1 %678, %v534_v3  }
 0x2e5   :  { %578 = vperm.xlu1 %678, %v535_v27  }
 0x2ed   :  { %587 = vperm.xlu1 %678, %v538_v5  }
 0x2f5   :  { %590 = vperm.xlu1 %678, %v539_v48  }
 0x2fd   :  { %596 = vperm.xlu1 %678, %v541_v30  }
 0x305   :  { %605 = vperm.xlu1 %678, %v544_v2  }
 0x316   :  { %v582_v15 = vpop.permute.xlu2 %581 }
 0x317   :  { %v616_v60 = vperm.slane %v582_v15, %v892_v24 }
 0x32d   :  { %v600_v37 = vpop.permute.xlu2 %599 }
 0x32e   :  { %v585_v12 = vpop.permute.xlu0 %584  ;;  %v622_v20 = vperm.slane %v600_v37, %v892_v24 }
 0x32f   :  { %v564_v7 = vpop.permute.xlu1 %563  ;;  %v617_v28 = vperm.slane %v585_v12, %v892_v24 }
 0x330   :  { %v610_v19 = vperm.slane %v564_v7, %v892_v24 }
 0x335   :  { %v609_v42 = vpop.permute.xlu2 %608 }
 0x336   :  { %v625_v53 = vperm.slane %v609_v42, %v892_v24 }
 0x337   :  { %v567_v8 = vpop.permute.xlu1 %566 }
 0x338   :  { %v611_v25 = vperm.slane %v567_v8, %v892_v24 }
 0x33a   :  { %v626_v17 = vsel %vm274_vm2, %v611_v25, %v610_v19 }
 0x33f   :  { %v570_v49 = vpop.permute.xlu1 %569 }
 0x340   :  { %v612_v14 = vperm.slane %v570_v49, %v892_v24 }
 0x342   :  { %v627_v18 = vsel %vm276_vm3, %v612_v14, %v626_v17 }
 0x345   :  { %v594_v35 = vpop.permute.xlu0 %593 }
 0x346   :  { %v620_v47 = vperm.slane %v594_v35, %v892_v24 }
 0x347   :  { %v573_v9 = vpop.permute.xlu1 %572 }
 0x348   :  { %v613_v44 = vperm.slane %v573_v9, %v892_v24 }
 0x34a   :  { %v628_v22 = vsel %vm278_vm4, %v613_v44, %v627_v18 }
 0x34d   :  { %v603_v52 = vpop.permute.xlu0 %602 }
 0x34e   :  { %v623_v56 = vperm.slane %v603_v52, %v892_v24 }
 0x34f   :  { %v576_v13 = vpop.permute.xlu1 %575 }
 0x350   :  { %v614_v29 = vperm.slane %v576_v13, %v892_v24 }
 0x352   :  { %v629_v26 = vsel %vm280_vm5, %v614_v29, %v628_v22 }
 0x357   :  { %v579_v21 = vpop.permute.xlu1 %578 }
 0x358   :  { %v615_v41 = vperm.slane %v579_v21, %v892_v24 }
 0x35a   :  { %v630_v10 = vsel %vm282_vm6, %v615_v41, %v629_v26 }
 0x35b   :  { %v631_v31 = vsel %vm284_vm7, %v616_v60, %v630_v10 }
 0x35c   :  { %v632_v32 = vsel %vm286_vm8, %v617_v28, %v631_v31 }
 0x35d   :  { %642 = vst.msk [vmem:[%s1120_s4] sm:$0xff] %vm297_vm9, %v632_v32 }
 0x35f   :  { %v588_v33 = vpop.permute.xlu1 %587 }
 0x360   :  { %v618_v38 = vperm.slane %v588_v33, %v892_v24 }
 0x367   :  { %v591_v34 = vpop.permute.xlu1 %590 }
 0x368   :  { %v619_v36 = vperm.slane %v591_v34, %v892_v24 }
 0x36a   :  { %v633_v39 = vsel %vm274_vm2, %v619_v36, %v618_v38 }
 0x36b   :  { %v634_v51 = vsel %vm276_vm3, %v620_v47, %v633_v39 }
 0x36f   :  { %v597_v45 = vpop.permute.xlu1 %596 }
 0x370   :  { %v621_v50 = vperm.slane %v597_v45, %v892_v24 }
 0x372   :  { %v635_v43 = vsel %vm278_vm4, %v621_v50, %v634_v51 }
 0x373   :  { %v636_v55 = vsel %vm280_vm5, %v622_v20, %v635_v43 }
 0x374   :  { %v637_v57 = vsel %vm282_vm6, %v623_v56, %v636_v55 }
 0x377   :  { %v606_v61 = vpop.permute.xlu1 %605 }
 0x378   :  { %v624_v11 = vperm.slane %v606_v61, %v892_v24 }
 0x37a   :  { %v638_v58 = vsel %vm284_vm7, %v624_v11, %v637_v57 }
 0x37b   :  { %v639_v59 = vsel %vm286_vm8, %v625_v53, %v638_v58 }
 0x37c   :  { %643 = vst.msk [vmem:[%s1120_s4 + $0x8] sm:$0xff] %vm297_vm9, %v639_v59 }

</bundles_post_ra>
